<compile_context>
chip_gen: v7x
topology: tpu7x:2x2x1
jax: 0.10.0
libtpu: 0.0.40
codegen_flags: <defaults>
</compile_context>

<pallas_src>
import functools
import math

import jax
import jax.numpy as jnp
from jax import lax
from jax.experimental import pallas as pl
from jax.experimental.pallas import tpu as pltpu


def _vmem_capacity_bytes():
    """Physical per-core VMEM (128 MiB on v5e/v6e, 64 MiB on v7x)."""
    try:
        return int(pltpu.get_tpu_info().vmem_capacity_bytes)
    except Exception:
        return 64 * 1024 * 1024          # conservative fallback (v7x per-core)


def _cls_head_kernel(tok_ref, w_ref, b_ref, out_ref, feat_ref, acc_ref, *, inv_t):
    """Streaming token-mean + linear + softmax head.

    Grid: (B // TB, T // TT); the T axis (last, 'arbitrary') is the reduction.
      tok_ref:  (TB, TT, D)   bf16 token tile (dominant HBM stream)
      w_ref:    (D, NCP)      bf16 fc weight, transposed, classes padded to 128
      b_ref:    (1, NCP)      f32 fc bias, padded lanes = -1e30 (softmax mask)
      out_ref:  (TB, NCP)     f32 softmax probabilities (lane-dense store)
      feat_ref: (TB, D)       f32 mean-pooled features
      acc_ref:  (TB, D)       f32 running token sum (VMEM scratch)
    """
    t = pl.program_id(1)

    @pl.when(t == 0)
    def _():
        acc_ref[...] = jnp.zeros_like(acc_ref)

    tb, tt, d = tok_ref.shape

    # Streaming reduce: sub-chunk the token tile so the bf16->f32 cast never
    # materializes a full (TB, TT, D) f32 temp.  Keeps VMEM/vreg pressure flat
    # as TT grows (critical on v7x's 64 MiB VMEM).
    sub = tt
    for s in (256, 128, 64, 32, 16, 8):
        if tt % s == 0 and tb * s * d * 4 <= 512 * 1024:
            sub = s
            break
    n_sub = tt // sub

    def body(i, acc):
        off = pl.multiple_of(i * sub, sub)
        chunk = tok_ref[:, pl.ds(off, sub), :]
        return acc + jnp.sum(chunk.astype(jnp.float32), axis=1)

    partial = lax.fori_loop(0, n_sub, body,
                            jnp.zeros((tb, d), jnp.float32),
                            unroll=(n_sub <= 8))
    acc_ref[...] += partial

    @pl.when(t == pl.num_programs(1) - 1)
    def _():
        feats = acc_ref[...] * inv_t                                   # (TB, D)
        feat_ref[...] = feats
        # bf16 x bf16 MXU matmul with f32 accumulation; runs once per batch
        # tile so accuracy impact on a softmax head is negligible.
        logits = jnp.dot(feats.astype(jnp.bfloat16), w_ref[...],
                         preferred_element_type=jnp.float32) + b_ref[...]
        m = jnp.max(logits, axis=-1, keepdims=True)
        e = jnp.exp(logits - m)                  # padded lanes -> exp(-1e30) = 0
        denom = jnp.sum(e, axis=-1, keepdims=True)
        out_ref[...] = e / denom                 # exact normalization


def _choose_tb(b, cap=32):
    """Batch tile: multiple of 8 (dense sublane output stores) or the full
    batch (always legal).  Prefer >= 2 batch blocks so megacore sharding via
    dimension_semantics can split the memory-bound stream across both v7x
    TensorCores."""
    cands = [tb for tb in range(min(b, cap), 0, -1)
             if b % tb == 0 and (tb % 8 == 0 or tb == b)]
    if not cands:
        cands = [b]
    for tb in cands:
        if b // tb >= 2:
            return tb
    return cands[0]


def _choose_tt(t, tb, d, tok_bytes, target_bytes):
    """Largest TT dividing T, a multiple of 16 (bf16 sublane packing), with the
    token tile within the generation-aware target."""
    best = None
    for tt in range(16, t + 1, 16):
        if t % tt == 0 and tb * tt * d * tok_bytes <= target_bytes:
            best = tt
    if best is None:
        for tt in range(8, t + 1, 8):
            if t % tt == 0 and tb * tt * d * tok_bytes <= target_bytes:
                best = tt
    return best if best is not None else t      # full extent: always legal


def _spec(shape, index_map, buffers=None):
    """BlockSpec with optional pipelining depth; degrades gracefully if the
    running jax has no pipeline_mode kwarg."""
    if buffers is None:
        return pl.BlockSpec(shape, index_map)
    try:
        return pl.BlockSpec(shape, index_map, pipeline_mode=pl.Buffered(buffers))
    except TypeError:
        return pl.BlockSpec(shape, index_map)


def classification_head(tokens, fc_weight, fc_bias, *, tb=None, tt=None,
                        interpret=False):
    """tokens: (B, T, D) any float dtype (streamed as-is, accumulated in f32).
       fc_weight: (NC, D) torch-layout weight; fc_bias: (NC,).
       Returns (probs (B, NC) f32, feats (B, D) f32)."""
    B, T, D = tokens.shape
    NC = fc_weight.shape[0]
    NCP = max(128, ((NC + 127) // 128) * 128)     # lane-dense class dimension

    # One-time weight/bias prep (outside the hot token stream): classes on the
    # lane axis.  Weight in bf16 (halves resident VMEM, MXU-native one-pass);
    # bias stays f32 so the -1e30 padding does not saturate and padded logits
    # vanish under softmax with no dilution / NaN.
    # TODO(synk): for a real backbone, pad D to a multiple of 128 before the
    # head; D=64 here equals the full array dim so the BlockSpec is legal.
    w_t = jnp.pad(fc_weight.astype(jnp.bfloat16).T, ((0, 0), (0, NCP - NC)))
    b_p = jnp.pad(fc_bias.astype(jnp.float32).reshape(1, NC),
                  ((0, 0), (0, NCP - NC)), constant_values=-1e30)

    tok_bytes = tokens.dtype.itemsize
    capacity = _vmem_capacity_bytes()
    # Generation-aware token-tile target: ~16 MiB on 128 MiB VMEM (v5e/v6e),
    # ~8 MiB on 64 MiB VMEM (v7x); amortizes the ~0.35 us per-grid-step
    # overhead against the HBM stream.
    target_tile_bytes = max(2 << 20, capacity // 8)

    if tb is None:
        tb = _choose_tb(B)
    if tt is None:
        tt = _choose_tt(T, tb, D, tok_bytes, target_tile_bytes)
    grid = (B // tb, T // tt)

    tile_bytes = tb * tt * D * tok_bytes
    resident = D * NCP * 2 + NCP * 4                 # single-buffered bf16 W + f32 bias
    out_bytes = 2 * (tb * NCP * 4 + tb * D * 4)      # double-buffered outputs
    scratch_bytes = tb * D * 4

    # Deeper token pipelining when there are enough reduction steps and VMEM
    # headroom (hides DMA issue latency/jitter at v7x's 3.2 TB/s).
    tok_buffers = 3 if (grid[1] >= 3 and
                        3 * tile_bytes + resident + out_bytes + scratch_bytes
                        <= int(0.7 * capacity)) else 2

    est = tok_buffers * tile_bytes + resident + out_bytes + scratch_bytes
    # Explicit scoped-VMEM limit, keyed off physical capacity (essential on
    # v5e whose default scoped limit is only 16 MiB of 128 MiB physical).
    vmem_limit = int(min(int(0.9 * capacity), max(4 << 20, int(1.5 * est))))

    kernel = functools.partial(_cls_head_kernel, inv_t=1.0 / T)

    # TODO(synk): for very large D*NC (e.g. the module default dim_feature=294912)
    # the weight no longer fits VMEM; emit only mean-pooled feats from the
    # kernel and do the (B,D)@(D,NC)+softmax in plain XLA instead.
    probs_p, feats = pl.pallas_call(
        kernel,
        out_shape=(
            jax.ShapeDtypeStruct((B, NCP), jnp.float32),
            jax.ShapeDtypeStruct((B, D), jnp.float32),
        ),
        grid_spec=pltpu.PrefetchScalarGridSpec(
            num_scalar_prefetch=0,
            grid=grid,
            in_specs=[
                _spec((tb, tt, D), lambda b, t: (b, t, 0), tok_buffers),
                _spec((D, NCP), lambda b, t: (0, 0), 1),
                _spec((1, NCP), lambda b, t: (0, 0), 1),
            ],
            out_specs=(
                pl.BlockSpec((tb, NCP), lambda b, t: (b, 0)),
                pl.BlockSpec((tb, D), lambda b, t: (b, 0)),
            ),
            scratch_shapes=[pltpu.VMEM((tb, D), jnp.float32)],
        ),
        compiler_params=pltpu.CompilerParams(
            dimension_semantics=("parallel", "arbitrary"),
            vmem_limit_bytes=vmem_limit,
        ),
        interpret=interpret,
    )(tokens, w_t, b_p)

    return probs_p[:, :NC], feats


def frozen_backbone_encode(x, patch=4, out_dtype=jnp.bfloat16):
    """Stand-in for the frozen backbone: deterministic patchify to tokens.

    Tokens are emitted in bf16 so the dominant HBM stream into the head kernel
    is half-width; accumulation stays in f32 inside the kernel.
    """
    # TODO(synk): real `model(x, return_encoded_tokens=True)` is an arbitrary
    # external frozen encoder; represented here by parameter-free patching.
    B, C, H, W = x.shape
    gh, gw = H // patch, W // patch
    t = x.reshape(B, C, gh, patch, gw, patch)
    t = jnp.transpose(t, (0, 2, 4, 1, 3, 5))                  # (B, gh, gw, C, p, p)
    return t.reshape(B, gh * gw, C * patch * patch).astype(out_dtype)


def classification_task_forward(x, fc_weight, fc_bias, return_features=False,
                                **head_kwargs):
    tokens = frozen_backbone_encode(x)                        # (B, T, D) bf16
    # feats is a second kernel output, so return_features never re-reads tokens.
    probs, feats = classification_head(tokens, fc_weight, fc_bias, **head_kwargs)
    if return_features:
        return probs, feats
    return probs


if __name__ == "__main__":
    key = jax.random.PRNGKey(0)
    k_x, k_w = jax.random.split(key)

    # Small shapes consistent with the module's forward
    B, C, H, W = 2, 4, 16, 16
    patch = 4
    T = (H // patch) * (W // patch)        # 16 tokens
    dim_feature = C * patch * patch        # 64
    n_classes = 10

    x = jax.random.normal(k_x, (B, C, H, W), dtype=jnp.float32)

    # fc = nn.Linear(dim_feature, n_classes); kaiming_uniform_ weight, bias=0
    bound = math.sqrt(6.0 / dim_feature)
    fc_weight = jax.random.uniform(
        k_w, (n_classes, dim_feature), dtype=jnp.float32, minval=-bound, maxval=bound
    )
    fc_bias = jnp.zeros((n_classes,), dtype=jnp.float32)

    # tt=8 forces a 2-step reduction over the token axis so the
    # init / accumulate / finalize pipeline is exercised even at toy sizes.
    probs, feats = classification_task_forward(
        x, fc_weight, fc_bias, return_features=True, tt=8)
    probs = jax.block_until_ready(probs)
    feats = jax.block_until_ready(feats)

    # quiet correctness check vs. pure-JAX reference on the same bf16 tokens
    tokens_ref = frozen_backbone_encode(x).astype(jnp.float32)
    feats_ref = jnp.mean(tokens_ref, axis=1)
    logits_ref = feats_ref @ fc_weight.T + fc_bias
    probs_ref = jax.nn.softmax(logits_ref, axis=1)

    assert probs.shape == (B, n_classes)
    assert feats.shape == (B, dim_feature)
    assert jnp.allclose(feats, feats_ref, atol=2e-3, rtol=2e-3)
    assert jnp.allclose(probs, probs_ref, atol=3e-3, rtol=3e-3)
    assert jnp.allclose(jnp.sum(probs, axis=1), 1.0, atol=2e-3)

    print("KERNEL_OK")
</pallas_src>

<mosaic_0001>
module attributes {stable_mosaic.version = 11 : i64} {
  func.func @_cls_head_kernel(%arg0: i32, %arg1: i32, %arg2: memref<2x8x64xbf16, #tpu.memory_space<vmem>>, %arg3: memref<64x128xbf16, #tpu.memory_space<vmem>>, %arg4: memref<1x128xf32, #tpu.memory_space<vmem>>, %arg5: memref<2x128xf32, #tpu.memory_space<vmem>>, %arg6: memref<2x64xf32, #tpu.memory_space<vmem>>, %arg7: memref<2x64xf32, #tpu.memory_space<vmem>>) attributes {dimension_semantics = [#tpu.dimension_semantics<parallel>, #tpu.dimension_semantics<arbitrary>], iteration_bounds = array<i64: 1, 2>, scalar_prefetch = 0 : i64, scratch_operands = 1 : i64, tpu.core_type = #tpu.core_type<tc>, window_params = [{pipeline_mode = #tpu.pipeline_mode<double_buffered>, transform_indices = @transform_0, window_bounds = array<i64: 2, 8, 64>}, {pipeline_mode = #tpu.pipeline_mode<synchronous>, transform_indices = @transform_1, window_bounds = array<i64: 64, 128>}, {pipeline_mode = #tpu.pipeline_mode<synchronous>, transform_indices = @transform_2, window_bounds = array<i64: 1, 128>}, {transform_indices = @transform_3, window_bounds = array<i64: 2, 128>}, {transform_indices = @transform_4, window_bounds = array<i64: 2, 64>}]} {
    %c0_i32 = arith.constant 0 : i32
    %0 = arith.cmpi eq, %arg1, %c0_i32 : i32
    %1 = arith.extui %0 : i1 to i32
    %c0_i32_0 = arith.constant 0 : i32
    %2 = arith.cmpi ne, %1, %c0_i32_0 : i32
    scf.if %2 {
      %cst_10 = arith.constant 0.000000e+00 : f32
      %17 = vector.broadcast %cst_10 : f32 to vector<2x64xf32>
      %c0_11 = arith.constant 0 : index
      %c0_12 = arith.constant 0 : index
      %18 = vector.load %arg7[%c0_11, %c0_12] : memref<2x64xf32, #tpu.memory_space<vmem>>, vector<2x64xf32>
      tpu.vector_store %arg7[%c0_11, %c0_12], %17 {strides = array<i32>} : memref<2x64xf32, #tpu.memory_space<vmem>>, vector<2x64xf32>,
    } else {
    }
    %cst = arith.constant 0.000000e+00 : f32
    %3 = vector.broadcast %cst : f32 to vector<2x64xf32>
    %c0_i32_1 = arith.constant 0 : i32
    %c8_i32 = arith.constant 8 : i32
    %4 = arith.muli %c0_i32_1, %c8_i32 : i32
    %5 = tpu.assume_multiple %4, 8 : i32
    %c0 = arith.constant 0 : index
    %6 = arith.index_cast %5 : i32 to index
    %c0_2 = arith.constant 0 : index
    %7 = vector.load %arg2[%c0, %6, %c0_2] : memref<2x8x64xbf16, #tpu.memory_space<vmem>>, vector<2x8x64xbf16>
    %8 = arith.extf %7 : vector<2x8x64xbf16> to vector<2x8x64xf32>
    %cst_3 = arith.constant dense<0.000000e+00> : vector<2x64xf32>
    %9 = vector.multi_reduction <add>, %8, %cst_3 [1] : vector<2x8x64xf32> to vector<2x64xf32>
    %10 = arith.addf %3, %9 : vector<2x64xf32>
    %c1_i32 = arith.constant 1 : i32
    %c0_4 = arith.constant 0 : index
    %c0_5 = arith.constant 0 : index
    %11 = vector.load %arg7[%c0_4, %c0_5] : memref<2x64xf32, #tpu.memory_space<vmem>>, vector<2x64xf32>
    %12 = arith.addf %11, %10 : vector<2x64xf32>
    %c0_6 = arith.constant 0 : index
    %c0_7 = arith.constant 0 : index
    %13 = vector.load %arg7[%c0_6, %c0_7] : memref<2x64xf32, #tpu.memory_space<vmem>>, vector<2x64xf32>
    tpu.vector_store %arg7[%c0_6, %c0_7], %12 {strides = array<i32>} : memref<2x64xf32, #tpu.memory_space<vmem>>, vector<2x64xf32>,
    %c1_i32_8 = arith.constant 1 : i32
    %14 = arith.cmpi eq, %arg1, %c1_i32_8 : i32
    %15 = arith.extui %14 : i1 to i32
    %c0_i32_9 = arith.constant 0 : i32
    %16 = arith.cmpi ne, %15, %c0_i32_9 : i32
    scf.if %16 {
      %c0_10 = arith.constant 0 : index
      %c0_11 = arith.constant 0 : index
      %17 = vector.load %arg7[%c0_10, %c0_11] : memref<2x64xf32, #tpu.memory_space<vmem>>, vector<2x64xf32>
      %cst_12 = arith.constant 6.250000e-02 : f32
      %18 = vector.broadcast %cst_12 : f32 to vector<2x64xf32>
      %19 = arith.mulf %17, %18 : vector<2x64xf32>
      %c0_13 = arith.constant 0 : index
      %c0_14 = arith.constant 0 : index
      %20 = vector.load %arg6[%c0_13, %c0_14] : memref<2x64xf32, #tpu.memory_space<vmem>>, vector<2x64xf32>
      tpu.vector_store %arg6[%c0_13, %c0_14], %19 {strides = array<i32>} : memref<2x64xf32, #tpu.memory_space<vmem>>, vector<2x64xf32>,
      %21 = arith.truncf %19 : vector<2x64xf32> to vector<2x64xbf16>
      %c0_15 = arith.constant 0 : index
      %c0_16 = arith.constant 0 : index
      %22 = vector.load %arg3[%c0_15, %c0_16] : memref<64x128xbf16, #tpu.memory_space<vmem>>, vector<64x128xbf16>
      %cst_17 = arith.constant dense<0.000000e+00> : vector<2x128xf32>
      %23 = tpu.matmul %21, %22, %cst_17 {dimension_numbers = #tpu.dot_dimension_numbers<[1], [0], [0], [1], [0, 0, 1, 1], [], []>} : vector<2x64xbf16>, vector<64x128xbf16>, vector<2x128xf32> -> vector<2x128xf32>
      %c0_18 = arith.constant 0 : index
      %c0_19 = arith.constant 0 : index
      %24 = vector.load %arg4[%c0_18, %c0_19] : memref<1x128xf32, #tpu.memory_space<vmem>>, vector<1x128xf32>
      %25 = vector.broadcast %24 : vector<1x128xf32> to vector<2x128xf32>
      %26 = arith.addf %23, %25 : vector<2x128xf32>
      %cst_20 = arith.constant dense<0xFF800000> : vector<2xf32>
      %27 = vector.multi_reduction <maximumf>, %26, %cst_20 [1] : vector<2x128xf32> to vector<2xf32>
      %28 = vector.shape_cast %27 : vector<2xf32> to vector<2x1xf32>
      %29 = vector.broadcast %28 : vector<2x1xf32> to vector<2x128xf32>
      %30 = arith.subf %26, %29 : vector<2x128xf32>
      %31 = math.exp %30 : vector<2x128xf32>
      %cst_21 = arith.constant dense<0.000000e+00> : vector<2xf32>
      %32 = vector.multi_reduction <add>, %31, %cst_21 [1] : vector<2x128xf32> to vector<2xf32>
      %33 = vector.shape_cast %32 : vector<2xf32> to vector<2x1xf32>
      %34 = vector.broadcast %33 : vector<2x1xf32> to vector<2x128xf32>
      %35 = arith.divf %31, %34 : vector<2x128xf32>
      %c0_22 = arith.constant 0 : index
      %c0_23 = arith.constant 0 : index
      %36 = vector.load %arg5[%c0_22, %c0_23] : memref<2x128xf32, #tpu.memory_space<vmem>>, vector<2x128xf32>
      tpu.vector_store %arg5[%c0_22, %c0_23], %35 {strides = array<i32>} : memref<2x128xf32, #tpu.memory_space<vmem>>, vector<2x128xf32>,
    } else {
    }
    return
  }
  func.func @transform_0(%arg0: i32, %arg1: i32) -> (i32, i32, i32) {
    %c0_i32 = arith.constant 0 : i32
    %c0_i32_0 = arith.constant 0 : i32
    return %arg0, %arg1, %c0_i32 : i32, i32, i32
  }
  func.func @transform_1(%arg0: i32, %arg1: i32) -> (i32, i32) {
    %c0_i32 = arith.constant 0 : i32
    %c0_i32_0 = arith.constant 0 : i32
    %c0_i32_1 = arith.constant 0 : i32
    return %c0_i32, %c0_i32_0 : i32, i32
  }
  func.func @transform_2(%arg0: i32, %arg1: i32) -> (i32, i32) {
    %c0_i32 = arith.constant 0 : i32
    %c0_i32_0 = arith.constant 0 : i32
    %c0_i32_1 = arith.constant 0 : i32
    return %c0_i32, %c0_i32_0 : i32, i32
  }
  func.func @transform_3(%arg0: i32, %arg1: i32) -> (i32, i32) {
    %c0_i32 = arith.constant 0 : i32
    %c0_i32_0 = arith.constant 0 : i32
    return %arg0, %c0_i32 : i32, i32
  }
  func.func @transform_4(%arg0: i32, %arg1: i32) -> (i32, i32) {
    %c0_i32 = arith.constant 0 : i32
    %c0_i32_0 = arith.constant 0 : i32
    return %arg0, %c0_i32 : i32, i32
  }
}

</mosaic_0001>

<bundles_post_ra>
// kernel: tpu_custom_call.1
= control target key start
LH: loop header
LB: loop body
LE: loop exit
PB: predicated region body
PF: predicated region fallthrough
CT: control target
= control target key end

     0   :  { %10 = vsyncpa [#allocation4], 0  ;;  %s1069_s0 = inlined_call_operand.hbm [shape: bf16[2,16,64], index: 0, kind: input, shape index: {}]   ;;  %s1070_s1 = inlined_call_operand.hbm [shape: bf16[64,128], index: 1, kind: input, shape index: {}]   ;;  %s1071_s2 = inlined_call_operand.vmem [shape: f32[1,128], index: 2, kind: input, shape index: {}]   ;;  %s1072_s3 = inlined_call_operand.hbm [shape: f32[2,128], index: 3, kind: output, shape index: {0}]   ;;  %s1073_s4 = inlined_call_operand.hbm [shape: f32[2,64], index: 4, kind: output, shape index: {1}]  }
   0x1   :  { %12 = vsyncpa [#allocation4 + $0x1], 0 }
   0x2   :  { %13 = vsyncpa [#allocation7], 0 }
   0x3   :  { %14 = vsyncpa [#allocation5], 0 }
   0x4   :  { %15 = vsyncpa [#allocation10], 0  ;;  %s840_s15 = smov 0   ;;  %s842_s16 = smov 0  }
   0x5   :  { %s844_s17 = smov 0   ;;  %s846_s18 = smov 0  }
   0x6   :  { %s848_s19 = smov 0   ;;  %s850_s20 = smov 0  }
   0x7 LB: > { %s493_s21 = sadd.s32 4294967295, %s803_s20   ;;  %p49_p0 = scmp.ne.s32.totalorder %s791_s17, %s787_s16  ;;  %s803_s20 = sphi %s850_s20, %s21_s20   ;;  %s799_s19 = sphi %s848_s19, %s1093_s19   ;;  %s795_s18 = sphi %s846_s18, %s1092_s18   ;;  %s791_s17 = sphi %s844_s17, %s1091_s17   ;;  %s787_s16 = sphi %s842_s16, %s1090_s16   ;;  %s783_s15 = sphi %s840_s15, %s1089_s15  }
   0x8   : > { %p50_p1 = scmp.eq.s32.totalorder %s803_s20, 0  ;;  %p55_p2 = scmp.ne.s32.totalorder %s787_s16, %s783_s15 }
   0x9   : > { %p875_p3 = scmp.eq.s32.totalorder %s493_s21, 0  ;;  %p494_p4 = scmp.ge.s32.totalorder %s803_s20, 1 }
   0xa   : > { %p51_p5 = por %p50_p1, %p49_p0  ;;  %p160_p6 = scmp.lt.s32.totalorder %s803_s20, 3 }
   0xb   : > { %s1079_s22 = scalar_select %p875_p3, 1, 0 }
   0xc   : > { %p883_p7 = por %p875_p3, %p55_p2  ;;  %p887_p8 = pnand %p494_p4, %p160_p6 }
   0xd   : > { %s805_s25 = smov [#allocation6]   ;;  %p560_p11 = scmp.lt.s32.totalorder %s803_s20, 2 }
   0xe   : > { %s1080_s23 = scalar_select %p883_p7, 1, 0 }
   0xf   : > { %s1081_s24 = scalar_select %p887_p8, 1, 0 }
  0x10   : > { %s172_s26 = sshll.u32 %s805_s25, 4  ;;  %p551_p9 = pneg %p887_p8  ;;  %s173_s26 = int_to_ptr.vmem [resolvable:$true] %s172_s26 }
  0x11   : > { %s42_s28 = sadd.s32 1, %s791_s17  ;;  %p901_p12 = pnand %p560_p11, %p51_p5 }
  0x12   : > { %p895_p10 = pnand %p551_p9, %p875_p3  ;;  %s631_s6 = scalar_lea.hbm %s1070_s1, 512 }
  0x13   : > { %s1083_s29 = scalar_select %p901_p12, 1, 0 }
  0x14   : > { %p632_p13 = scmp.ne.s32.totalorder %s1070_s1, %s631_s6  ;;  %p633_p0 = pneg %p895_p10 }
  0x15   : > { %p638_p4 = scmp.lt.u32.totalorder %s631_s6, %s1070_s1 }
  0x16   : > { %p634_p1 = pnand %p633_p0, %p632_p13 }
  0x18   : > { %p635_p2 = pneg %p634_p1 }
  0x1a   : > { %p640_p5 = pnand %p638_p4, %p635_p2 }
  0x1c   : > { %643 = shalt.err (!%p640_p5)
}
  0x1d   : > { %s644_s11 = scalar_lea.vmem %s173_s26, 512  ;;  %p652_p3 = scmp.lt.s32.totalorder %s173_s26, %s173_s26 }
  0x1e   : > { %p645_p6 = scmp.ne.s32.totalorder %s173_s26, %s644_s11  ;;  %p653_p7 = scmp.lt.s32.totalorder %s644_s11, %s644_s11 }
  0x20   : > { %p647_p9 = pnand %p645_p6, %p633_p0  ;;  %p654_p8 = por %p653_p7, %p652_p3 }
  0x22   : > { %p648_p11 = pneg %p647_p9 }
  0x24   : > { %p655_p12 = pnand %p654_p8, %p648_p11 }
  0x26   : > { %658 = shalt.err (!%p655_p12)
}
  0x27   : > { %s806_s12 = smov 64   ;;  %s807_s13 = smov 4  }
  0x28   : > { %554 = dma.hbm_to_vmem [thread:$0]  (!%p895_p10), %s1070_s1, 512, %s173_s26, [#allocation7], %s806_s12, %s806_s12, %s807_s13  }
  0x29   : > { %s30_s25 = sadd.s32 1, %s799_s19  ;;  %s189_s30 = sand.u32 1, %s791_s17  }
  0x2a   : > { %p31_p3 = scmp.ge.s32.totalorder %s30_s25, 2  ;;  %s497_s5 = sshll.u32 %s189_s30, 3 }
  0x2b   : > { %s498_s6 = sshll.u32 %s799_s19, 6  ;;  %s193_s26 = scalar_lea.vmem [#allocation3], %s497_s5 }
  0x2c   : > { %s1095_s25 = smov (%p31_p3, %s30_s25), 0  ;;  %s932_s27 = scalar_lea.hbm %s1069_s0, %s498_s6 }
  0x2d   : > { %s38_s9 = ssub.s32 %s799_s19, %s1095_s25  ;;  %s202_s10 = sshll.u32 %s193_s26, 4  ;;  %s936_s10 = int_to_ptr.vmem [resolvable:$true] %s202_s10 }
  0x2e   : > { %p40_p7 = scmp.eq.s32.totalorder %s38_s9, 0  ;;  %s943_s14 = scalar_lea.sflag [#allocation4], %s189_s30 }
  0x2f   : > { %s659_s15 = scalar_lea.hbm %s932_s27, 128  ;;  %p1084_p10 = scmp.ne.s32.totalorder %s1083_s29, 0 }
  0x30   : > { %s941_s11 = scalar_select %p40_p7, %s791_s17, %s42_s28  }
  0x31   : > { %p660_p8 = scmp.ne.s32.totalorder %s932_s27, %s659_s15  ;;  %p661_p12 = pneg %p1084_p10 }
  0x32   : > { %s664_s5 = scalar_lea.hbm %s1069_s0, 256  ;;  %p665_p1 = scmp.lt.u32.totalorder %s932_s27, %s1069_s0 }
  0x33   : > { %p662_p13 = pnand %p661_p12, %p660_p8  ;;  %p666_p2 = scmp.lt.u32.totalorder %s664_s5, %s659_s15 }
  0x34   : > { %p668_p5 = scmp.lt.u32.totalorder %s659_s15, %s932_s27 }
  0x35   : > { %p663_p0 = pneg %p662_p13  ;;  %p667_p4 = por %p666_p2, %p665_p1 }
  0x37   : > { %p669_p6 = por %p668_p5, %p667_p4 }
  0x39   : > { %p670_p9 = pnand %p669_p6, %p663_p0 }
  0x3b   : > { %673 = shalt.err (!%p670_p9)
}
  0x3c   : > { %s674_s28 = scalar_lea.vmem %s936_s10, 128  ;;  %s808_s30 = smov [#allocation3]  }
  0x3d   : > { %p675_p11 = scmp.ne.s32.totalorder %s936_s10, %s674_s28  ;;  %s679_s26 = sshll.u32 %s808_s30, 4  ;;  %s680_s26 = int_to_ptr.vmem [resolvable:$false] %s679_s26 }
  0x3e   : > { %s681_s6 = scalar_lea.vmem %s680_s26, 256  ;;  %p682_p8 = scmp.lt.s32.totalorder %s936_s10, %s680_s26 }
  0x3f   : > { %p677_p3 = pnand %p675_p11, %p661_p12  ;;  %p683_p13 = scmp.lt.s32.totalorder %s681_s6, %s674_s28 }
  0x41   : > { %p678_p7 = pneg %p677_p3  ;;  %p684_p1 = por %p683_p13, %p682_p8 }
  0x43   : > { %p685_p2 = pnand %p684_p1, %p678_p7 }
  0x45   : > { %688 = shalt.err (!%p685_p2)
}
  0x46   : > { %s809_s15 = smov 128   ;;  %p1085_p12 = scmp.ne.s32.totalorder %s1081_s24, 0 }
  0x47   : > { %558 = dma.hbm_to_vmem [thread:$0]  (!%p1084_p10), %s932_s27, 128, %s936_s10, %s943_s14, %s809_s15, %s806_s12, %s807_s13  }
  0x48   : > { %214 = sbr.rel (%p1085_p12) target bundleno = 700 (0x2bc), region = 32  ;;  %s216_s7 = sand.u32 (!%p1085_p12), 1, %s787_s16  }
  0x49   : > { %s500_s5 = sshll.u32 (!%p1085_p12), %s216_s7, 3  ;;  %s217_s8 = scalar_lea.sflag (!%p1085_p12), [#allocation4], %s216_s7 }
  0x4a   : > { %s220_s9 = scalar_lea.vmem (!%p1085_p12), [#allocation3], %s500_s5  ;;  %p1086_p0 = scmp.ne.s32.totalorder (!%p1085_p12), %s1080_s23, 0 }
  0x4f   : > { %766 = dma.done.wait (%p1086_p0), %s217_s8, 128  }
  0x50   : > { %768 = vsyncadd (%p1086_p0), %s217_s8, 4294967168  ;;  %p1087_p4 = scmp.ne.s32.totalorder %s1079_s22, 0 }
  0x52   : > { %770 = dma.done.wait (%p1087_p4), [#allocation7], 512  }
  0x53   : > { %772 = vsyncadd (%p1087_p4), [#allocation7], 4294966784  ;;  %p502_p10 = scmp.ne.s32.totalorder %s795_s18, 0 }
  0x54   : > { %vm250_vm0 = vcmask (!%p502_p10), 517120   ;;  %v810_v0 = vmov (!%p502_p10), 0.0  }
  0x55   : > { %249 = sbr.rel (%p502_p10) target bundleno = 92 (0x5c), region = 44  ;;  %251 = vst.msk [vmem:[#allocation2] sm:$0x3] (!%p502_p10), %vm250_vm0, %v810_v0 }
  0x5c PF: > { %v517_v1 = vld [vmem:[%s220_s9] sm:$0xff]   ;;  %vm256_vm1 = vcmask 523264   ;;  %vm276_vm2 = vcmask 1041409   ;;  %v273_v18 = vld [vmem:[#allocation2] sm:$0x3]  ;;  %vm280_vm3 = vcmask 517120  }
  0x5d   : > { %v518_v2 = vunpack.c.l.bf16 %v517_v1  ;;  %v519_v3 = vunpack.c.h.bf16 %v517_v1  ;;  %p503_p5 = scmp.ne.s32.totalorder %s795_s18, 1 }
  0x5e   : > { %v623_v21 = vld [vmem:[#allocation6] sm:$0xff] (!%p503_p5)   ;;  %v811_v22 = vmov (!%p503_p5), 0.0   ;;  %v624_v23 = vld [vmem:[#allocation6 + $0x8] sm:$0xff] (!%p503_p5)   ;;  %vm812_vm4 = vmmov (!%p503_p5), 0   ;;  %v625_v26 = vld [vmem:[#allocation6 + $0x10] sm:$0xff] (!%p503_p5)   ;;  %vm372_vm5 = vcmask (!%p503_p5), 1041408  }
  0x5f   : > { %v257_v4 = vsel %vm256_vm1, %v518_v2, 0.0  ;;  %v264_v5 = vsel %vm256_vm1, %v519_v3, 0.0  ;;  %525 = vmatprep.subr.bf16.mxu0 (!%p503_p5), %v811_v22  ;;  %533 = vmatprep.mubr.msk.bf16.mxu0 (!%p503_p5), %vm812_vm4, %v811_v22  ;;  %v626_v27 = vld [vmem:[#allocation6 + $0x18] sm:$0xff] (!%p503_p5)   ;;  %v504_v29 = vld [vmem:[%s1071_s2] ss:$0 sm:$0xff] (!%p503_p5) }
  0x60   : > { %v258_v6 = vrot.slane %v257_v4, 4  ;;  %v265_v7 = vrot.slane %v264_v5, 4  ;;  %526 = vmatpush3.bf16.msra.mxu0 (!%p503_p5), %v623_v21 }
  0x61   : > { %527 = vmatprep.subr.bf16.mxu0 (!%p503_p5), %v811_v22 }
  0x62   : > { %v259_v8 = vadd.f32 %v258_v6, %v257_v4  ;;  %v266_v9 = vadd.f32 %v265_v7, %v264_v5 }
  0x64   : > { %v260_v10 = vrot.slane %v259_v8, 2  ;;  %v267_v11 = vrot.slane %v266_v9, 2  ;;  %528 = vmatpush3.bf16.msra.mxu0 (!%p503_p5), %v624_v23 }
  0x65   : > { %529 = vmatprep.subr.bf16.mxu0 (!%p503_p5), %v811_v22 }
  0x66   : > { %v261_v12 = vadd.f32 %v260_v10, %v259_v8  ;;  %v268_v13 = vadd.f32 %v267_v11, %v266_v9 }
  0x68   : > { %v262_v14 = vrot.slane %v261_v12, 1  ;;  %v269_v15 = vrot.slane %v268_v13, 1  ;;  %530 = vmatpush3.bf16.msra.mxu0 (!%p503_p5), %v625_v26 }
  0x69   : > { %285 = sbr.rel (%p503_p5) target bundleno = 652 (0x28c), region = 48  ;;  %531 = vmatprep.subr.bf16.mxu0 (!%p503_p5), %v811_v22 }
  0x6a   : > { %v263_v16 = vadd.f32 %v262_v14, %v261_v12  ;;  %v270_v17 = vadd.f32 %v269_v15, %v268_v13 }
  0x6c   : > { %v277_v19 = vsel %vm276_vm2, %v270_v17, %v263_v16  ;;  %532 = vmatpush3.bf16.msra.mxu0 (!%p503_p5), %v626_v27 }
  0x6d   : > { %v279_v20 = vadd.f32 %v277_v19, %v273_v18 }
  0x6f   : > { %281 = vst.msk [vmem:[#allocation2] sm:$0x3] %vm280_vm3, %v279_v20 }
  0x76   : > { %v286_v24 = vld [vmem:[#allocation2] sm:$0x3] }
  0x77   : > { %v287_v25 = vmul.f32 0.0625, %v286_v24 }
  0x79   : > { %288 = vst.msk [vmem:[#allocation9] sm:$0x3] %vm280_vm3, %v287_v25  ;;  %v289_v28 = vpack.c.bf16 %v287_v25, %v287_v25 }
  0x7b   : > { %534 = vmatmul.mubr.msk.bf16.vlgmr.msra.gmra.mrb[0].mxu0 %vm256_vm1, %v289_v28 }
 0x14e   : > { %v366_v30 = vpop.f32.mrb[0].mxu0 }
 0x14f   : > { %v367_v31 = vadd.f32 %v504_v29, %v366_v30  ;;  %v535_v32 = vpop.f32.mrb[1].mxu0 }
 0x150   : > { %v369_v33 = vpop.f32.mrb[2].mxu0 }
 0x151   : > { %v536_v34 = vpop.f32.mrb[3].mxu0  ;;  %v373_v35 = vsel %vm372_vm5, %v367_v31, -inf }
 0x152   : > { %374 = vmax.xlane.f32.xlu0 %v373_v35 }
 0x1df   : > { %v375_v36 = vpop.xlane.xlu0 %374 }
 0x1e0   : > { %v376_v37 = vsub.f32 %v367_v31, %v375_v36 }
 0x1e2   : > { %v377_v38 = vmul.f32 1.442695, %v376_v37 }
 0x1e4   : > { %627 = vpow2.f32 %v377_v38 }
 0x1ee   : > { %v628_v39 = vpop.eup %627 }
 0x1ef   : > { %v379_v40 = vsel %vm372_vm5, %v628_v39, 0.0 }
 0x1f0   : > { %380 = vadd.xlane.f32.xlu0 %v379_v40 }
 0x27d   : > { %v381_v41 = vpop.xlane.xlu0 %380 }
 0x27e   : > { %629 = vrcp.f32 %v381_v41 }
 0x288   : > { %v630_v42 = vpop.eup %629 }
 0x289   : > { %v383_v43 = vmul.f32 %v630_v42, %v628_v39 }
 0x28b   : > { %384 = vst [vmem:[#allocation8] sm:$0x3] %v383_v43 }
 0x28c PF: > { %p996_p6 = scmp.eq.s32.totalorder %s493_s21, 1  ;;  %s813_s24 = smov [#allocation8]  }
 0x28d   : > { %s394_s29 = sshll.u32 %s813_s24, 4  ;;  %s814_s12 = smov [#allocation9]   ;;  %s395_s29 = int_to_ptr.vmem [resolvable:$true] %s394_s29 }
 0x28e   : > { %s407_s13 = sshll.u32 %s814_s12, 4  ;;  %s689_s27 = scalar_lea.vmem %s395_s29, 32  ;;  %s1000_s13 = int_to_ptr.vmem [resolvable:$true] %s407_s13 }
 0x28f   : > { %p690_p9 = scmp.ne.s32.totalorder %s395_s29, %s689_s27  ;;  %p696_p7 = scmp.lt.s32.totalorder %s395_s29, %s395_s29 }
 0x290   : > { %p697_p8 = scmp.lt.s32.totalorder %s689_s27, %s689_s27 }
 0x291   : > { %p691_p11 = pnand %p690_p9, %p996_p6 }
 0x292   : > { %p698_p13 = por %p697_p8, %p696_p7 }
 0x293   : > { %p692_p3 = pneg %p691_p11 }
 0x295   : > { %p699_p1 = pnand %p698_p13, %p692_p3 }
 0x297   : > { %702 = shalt.err (!%p699_p1)
}
 0x298   : > { %s703_s14 = scalar_lea.hbm %s1072_s3, 32 }
 0x299   : > { %p704_p2 = scmp.ne.s32.totalorder %s1072_s3, %s703_s14  ;;  %p709_p4 = scmp.lt.u32.totalorder %s703_s14, %s1072_s3 }
 0x29b   : > { %p705_p12 = pnand %p704_p2, %p996_p6 }
 0x29d   : > { %p706_p0 = pneg %p705_p12 }
 0x29f   : > { %p711_p10 = pnand %p709_p4, %p706_p0 }
 0x2a1   : > { %714 = shalt.err (!%p711_p10)
}
 0x2a2   : > { %544 = dma.vmem_to_hbm [thread:$0]  (%p996_p6), %s395_s29, 32, %s1072_s3, [#allocation5]  }
 0x2a3   : > { %s715_s5 = scalar_lea.vmem %s1000_s13, 32  ;;  %p722_p3 = scmp.lt.s32.totalorder %s1000_s13, %s1000_s13 }
 0x2a4   : > { %p716_p5 = scmp.ne.s32.totalorder %s1000_s13, %s715_s5  ;;  %p723_p7 = scmp.lt.s32.totalorder %s715_s5, %s715_s5 }
 0x2a6   : > { %p717_p9 = pnand %p716_p5, %p996_p6  ;;  %p724_p8 = por %p723_p7, %p722_p3 }
 0x2a8   : > { %p718_p11 = pneg %p717_p9 }
 0x2aa   : > { %p725_p13 = pnand %p724_p8, %p718_p11 }
 0x2ac   : > { %728 = shalt.err (!%p725_p13)
}
 0x2ad   : > { %s729_s18 = scalar_lea.hbm %s1073_s4, 32 }
 0x2ae   : > { %p730_p1 = scmp.ne.s32.totalorder %s1073_s4, %s729_s18  ;;  %p735_p0 = scmp.lt.u32.totalorder %s729_s18, %s1073_s4 }
 0x2b0   : > { %p731_p2 = pnand %p730_p1, %p996_p6 }
 0x2b2   : > { %p732_p12 = pneg %p731_p2 }
 0x2b4   : > { %p737_p4 = pnand %p735_p0, %p732_p12 }
 0x2b6   : > { %740 = shalt.err (!%p737_p4)
}
 0x2b7   : > { %546 = dma.vmem_to_hbm [thread:$0]  (%p996_p6), %s1000_s13, 32, %s1073_s4, [#allocation10]  }
 0x2b8   : > { %774 = dma.done.wait (%p996_p6), [#allocation5], 32  }
 0x2b9   : > { %776 = vsyncadd (%p996_p6), [#allocation5], 4294967264 }
 0x2ba   : > { %778 = dma.done.wait (%p996_p6), [#allocation10], 32  }
 0x2bb   : > { %780 = vsyncadd (%p996_p6), [#allocation10], 4294967264 }
 0x2bc PF: > { %s21_s20 = sadd.s32 1, %s803_s20   ;;  %s1089_s15 = smov %s787_s16 }
 0x2bd   : > { %p18_p10 = scmp.ge.s32.totalorder %s21_s20, 4   ;;  %s1090_s16 = smov %s791_s17 }
 0x2be   : > { %s1091_s17 = smov %s941_s11  ;;  %s1092_s18 = smov %s799_s19 }
 0x2bf   : > { %s1093_s19 = smov %s1095_s25  ;;  %20 = sbr.rel (!%p18_p10) target bundleno = 7 (0x7), region = 91 }
 0x2c6   :  { %424 = vsyncpa [#allocation4], 1 }
 0x2c7   :  { %426 = vsyncpa [#allocation4 + $0x1], 1 }
 0x2c8   :  { %427 = vsyncpa [#allocation7], 1 }
 0x2c9   :  { %428 = vsyncpa [#allocation5], 1 }
 0x2ca   :  { %430 = vsyncpa [#allocation5 + $0x1], 1 }
 0x2cb   :  { %431 = vsyncpa [#allocation10], 1 }

</bundles_post_ra>
